<compile_context>
chip_gen: v7x
topology: tpu7x:2x2x1
jax: 0.10.0
libtpu: 0.0.40
codegen_flags: <defaults>
</compile_context>

<pallas_src>
import jax
import jax.numpy as jnp
from jax.experimental import pallas as pl
from jax.experimental.pallas import tpu as pltpu


def _round_up(v, m):
    return ((v + m - 1) // m) * m


def make_gcnn_kernel(K, negative_slope=0.01):
    """Build a single-invocation kernel with the K-term loop fully unrolled."""

    def kernel(x_ref, adj_ref, w_ref, o_ref):
        # x_ref:   (B, N, D)            normalized node features
        # adj_ref: (max(K-1,1), N, N)   supports for orders 1..K-1 (identity skipped)
        # w_ref:   (K, D, Opad)         per-order weights, lane-padded to Opad
        # o_ref:   (B, N, Opad)
        B = x_ref.shape[0]
        for b in range(B):
            xb = x_ref[b]                                              # (N, D)
            # k = 0: support is the identity -> adj_0 @ x == x, skip the matmul.
            y = jnp.dot(xb, w_ref[0], preferred_element_type=jnp.float32)
            acc = jnp.where(y > 0, y, negative_slope * y)
            for k in range(1, K):
                t = jnp.dot(adj_ref[k - 1], xb,
                            preferred_element_type=jnp.float32)        # (N, D)
                y = jnp.dot(t, w_ref[k],
                            preferred_element_type=jnp.float32)        # (N, Opad)
                acc = acc + jnp.where(y > 0, y, negative_slope * y)
            o_ref[b] = acc

    return kernel


def gcnn_forward(x, A, weights, head, eps=1e-5):
    """x: (B, N, D) f32, A: (N, N) f32, weights: (K, D, O) f32 -> (B, head, N, O)."""
    B, N, D = x.shape
    K, _, O = weights.shape

    # --- BatchNorm2d(1) on x.unsqueeze(1): fresh module in training mode ---
    # single channel -> batch statistics over all elements (biased variance),
    # affine params at default init (gamma=1, beta=0).
    mean = jnp.mean(x)
    var = jnp.mean((x - mean) ** 2)
    x_n = ((x - mean) * jax.lax.rsqrt(var + eps)).astype(jnp.float32)

    # --- generate_adj: [I, A, A*A, A*A*A, ...] (elementwise powers, as in the
    # PyTorch code).  The identity term is handled analytically in the kernel,
    # so only orders >= 1 are materialized. ---
    supports = []
    L_iter = A.astype(jnp.float32)
    for _ in range(1, K):
        supports.append(L_iter)
        L_iter = L_iter * A
    if supports:
        adj_hi = jnp.stack(supports, axis=0)                 # (K-1, N, N)
    else:
        adj_hi = jnp.zeros((1, N, N), jnp.float32)           # dummy, unused (K == 1)

    # --- lane-dense output: pad O up to a multiple of 128 via zero weight
    # columns; padded columns stay exactly zero through leaky_relu + sum. ---
    O_pad = _round_up(max(O, 128), 128)
    w_pad = weights.astype(jnp.float32)
    if O_pad != O:
        w_pad = jnp.pad(w_pad, ((0, 0), (0, 0), (0, O_pad - O)))

    vmem = pltpu.MemorySpace.VMEM
    out_pad = pl.pallas_call(
        make_gcnn_kernel(K),
        out_shape=jax.ShapeDtypeStruct((B, N, O_pad), jnp.float32),
        in_specs=[
            pl.BlockSpec(memory_space=vmem),     # x_n
            pl.BlockSpec(memory_space=vmem),     # adj (orders >= 1)
            pl.BlockSpec(memory_space=vmem),     # padded weights
        ],
        out_specs=pl.BlockSpec(memory_space=vmem),
    )(x_n, adj_hi, w_pad)

    out = out_pad[:, :, :O]
    # PyTorch output shape is (B, head, N, O); all heads are identical.
    return jnp.broadcast_to(out[:, None, :, :], (B, head, N, O))


def gcnn_reference(x, A, weights, head, eps=1e-5):
    """Pure-JAX reference mirroring the PyTorch forward for validation."""
    B, N, D = x.shape
    K, _, O = weights.shape
    mean = jnp.mean(x)
    var = jnp.mean((x - mean) ** 2)
    x_n = (x - mean) / jnp.sqrt(var + eps)
    supports = [jnp.eye(N, dtype=jnp.float32)]
    L_iter = A
    for _ in range(1, K):
        supports.append(L_iter)
        L_iter = L_iter * A
    xh = jnp.broadcast_to(x_n[:, None, :, :], (B, head, N, D))
    result = None
    for k in range(K):
        o = jnp.einsum('ij,bhjd->bhid', supports[k], xh)
        o = jnp.einsum('bhid,do->bhio', o, weights[k])
        o = jnp.where(o > 0, o, 0.01 * o)
        result = o if result is None else result + o
    return result


if __name__ == "__main__":
    # Small, module-consistent shapes.
    B, N, D = 2, 16, 8          # batch, graph nodes, in_channels
    O, K, HEAD = 32, 3, 4       # out_channels, Chebyshev order K, heads

    key = jax.random.PRNGKey(0)
    kx, ka, kw = jax.random.split(key, 3)

    x = jax.random.normal(kx, (B, N, D), dtype=jnp.float32)
    A = jax.random.uniform(ka, (N, N), dtype=jnp.float32)

    # xavier_normal_ init for each GraphConvolution weight (D, O):
    # std = sqrt(2 / (fan_in + fan_out))
    std = (2.0 / (D + O)) ** 0.5
    weights = std * jax.random.normal(kw, (K, D, O), dtype=jnp.float32)

    out = gcnn_forward(x, A, weights, HEAD)
    out = jax.block_until_ready(out)

    ref = gcnn_reference(x, A, weights, HEAD)
    assert out.shape == (B, HEAD, N, O)
    assert jnp.allclose(out, ref, rtol=1e-4, atol=1e-4), "mismatch vs JAX reference"

    print("KERNEL_OK")
</pallas_src>

<mosaic_0001>
module attributes {stable_mosaic.version = 11 : i64} {
  func.func @kernel(%arg0: memref<2x16x8xf32, #tpu.memory_space<vmem>>, %arg1: memref<2x16x16xf32, #tpu.memory_space<vmem>>, %arg2: memref<3x8x128xf32, #tpu.memory_space<vmem>>, %arg3: memref<2x16x128xf32, #tpu.memory_space<vmem>>) attributes {dimension_semantics = [], scalar_prefetch = 0 : i64, scratch_operands = 0 : i64, tpu.core_type = #tpu.core_type<tc>} {
    %c0 = arith.constant 0 : index
    %c0_0 = arith.constant 0 : index
    %c0_1 = arith.constant 0 : index
    %0 = vector.load %arg0[%c0, %c0_0, %c0_1] : memref<2x16x8xf32, #tpu.memory_space<vmem>>, vector<1x16x8xf32>
    %1 = vector.shape_cast %0 : vector<1x16x8xf32> to vector<16x8xf32>
    %c0_2 = arith.constant 0 : index
    %c0_3 = arith.constant 0 : index
    %c0_4 = arith.constant 0 : index
    %2 = vector.load %arg2[%c0_2, %c0_3, %c0_4] : memref<3x8x128xf32, #tpu.memory_space<vmem>>, vector<1x8x128xf32>
    %3 = vector.shape_cast %2 : vector<1x8x128xf32> to vector<8x128xf32>
    %cst = arith.constant dense<0.000000e+00> : vector<16x128xf32>
    %4 = tpu.matmul %1, %3, %cst {dimension_numbers = #tpu.dot_dimension_numbers<[1], [0], [0], [1], [0, 0, 1, 1], [], []>} : vector<16x8xf32>, vector<8x128xf32>, vector<16x128xf32> -> vector<16x128xf32>
    %cst_5 = arith.constant 0.000000e+00 : f32
    %5 = vector.broadcast %cst_5 : f32 to vector<16x128xf32>
    %6 = arith.cmpf ogt, %4, %5 : vector<16x128xf32>
    %cst_6 = arith.constant 0.00999999977 : f32
    %7 = vector.broadcast %cst_6 : f32 to vector<16x128xf32>
    %8 = arith.mulf %7, %4 : vector<16x128xf32>
    %9 = arith.select %6, %4, %8 : vector<16x128xi1>, vector<16x128xf32>
    %c0_7 = arith.constant 0 : index
    %c0_8 = arith.constant 0 : index
    %c0_9 = arith.constant 0 : index
    %10 = vector.load %arg1[%c0_7, %c0_8, %c0_9] : memref<2x16x16xf32, #tpu.memory_space<vmem>>, vector<1x16x16xf32>
    %11 = vector.shape_cast %10 : vector<1x16x16xf32> to vector<16x16xf32>
    %cst_10 = arith.constant dense<0.000000e+00> : vector<16x8xf32>
    %12 = tpu.matmul %11, %1, %cst_10 {dimension_numbers = #tpu.dot_dimension_numbers<[1], [0], [0], [1], [0, 0, 1, 1], [], []>} : vector<16x16xf32>, vector<16x8xf32>, vector<16x8xf32> -> vector<16x8xf32>
    %c1 = arith.constant 1 : index
    %c0_11 = arith.constant 0 : index
    %c0_12 = arith.constant 0 : index
    %13 = vector.load %arg2[%c1, %c0_11, %c0_12] : memref<3x8x128xf32, #tpu.memory_space<vmem>>, vector<1x8x128xf32>
    %14 = vector.shape_cast %13 : vector<1x8x128xf32> to vector<8x128xf32>
    %cst_13 = arith.constant dense<0.000000e+00> : vector<16x128xf32>
    %15 = tpu.matmul %12, %14, %cst_13 {dimension_numbers = #tpu.dot_dimension_numbers<[1], [0], [0], [1], [0, 0, 1, 1], [], []>} : vector<16x8xf32>, vector<8x128xf32>, vector<16x128xf32> -> vector<16x128xf32>
    %cst_14 = arith.constant 0.000000e+00 : f32
    %16 = vector.broadcast %cst_14 : f32 to vector<16x128xf32>
    %17 = arith.cmpf ogt, %15, %16 : vector<16x128xf32>
    %cst_15 = arith.constant 0.00999999977 : f32
    %18 = vector.broadcast %cst_15 : f32 to vector<16x128xf32>
    %19 = arith.mulf %18, %15 : vector<16x128xf32>
    %20 = arith.select %17, %15, %19 : vector<16x128xi1>, vector<16x128xf32>
    %21 = arith.addf %9, %20 : vector<16x128xf32>
    %c1_16 = arith.constant 1 : index
    %c0_17 = arith.constant 0 : index
    %c0_18 = arith.constant 0 : index
    %22 = vector.load %arg1[%c1_16, %c0_17, %c0_18] : memref<2x16x16xf32, #tpu.memory_space<vmem>>, vector<1x16x16xf32>
    %23 = vector.shape_cast %22 : vector<1x16x16xf32> to vector<16x16xf32>
    %cst_19 = arith.constant dense<0.000000e+00> : vector<16x8xf32>
    %24 = tpu.matmul %23, %1, %cst_19 {dimension_numbers = #tpu.dot_dimension_numbers<[1], [0], [0], [1], [0, 0, 1, 1], [], []>} : vector<16x16xf32>, vector<16x8xf32>, vector<16x8xf32> -> vector<16x8xf32>
    %c2 = arith.constant 2 : index
    %c0_20 = arith.constant 0 : index
    %c0_21 = arith.constant 0 : index
    %25 = vector.load %arg2[%c2, %c0_20, %c0_21] : memref<3x8x128xf32, #tpu.memory_space<vmem>>, vector<1x8x128xf32>
    %26 = vector.shape_cast %25 : vector<1x8x128xf32> to vector<8x128xf32>
    %cst_22 = arith.constant dense<0.000000e+00> : vector<16x128xf32>
    %27 = tpu.matmul %24, %26, %cst_22 {dimension_numbers = #tpu.dot_dimension_numbers<[1], [0], [0], [1], [0, 0, 1, 1], [], []>} : vector<16x8xf32>, vector<8x128xf32>, vector<16x128xf32> -> vector<16x128xf32>
    %cst_23 = arith.constant 0.000000e+00 : f32
    %28 = vector.broadcast %cst_23 : f32 to vector<16x128xf32>
    %29 = arith.cmpf ogt, %27, %28 : vector<16x128xf32>
    %cst_24 = arith.constant 0.00999999977 : f32
    %30 = vector.broadcast %cst_24 : f32 to vector<16x128xf32>
    %31 = arith.mulf %30, %27 : vector<16x128xf32>
    %32 = arith.select %29, %27, %31 : vector<16x128xi1>, vector<16x128xf32>
    %33 = arith.addf %21, %32 : vector<16x128xf32>
    %c0_25 = arith.constant 0 : index
    %c0_26 = arith.constant 0 : index
    %c0_27 = arith.constant 0 : index
    %34 = vector.load %arg3[%c0_25, %c0_26, %c0_27] : memref<2x16x128xf32, #tpu.memory_space<vmem>>, vector<1x16x128xf32>
    %35 = vector.shape_cast %34 : vector<1x16x128xf32> to vector<16x128xf32>
    %36 = vector.shape_cast %33 : vector<16x128xf32> to vector<1x16x128xf32>
    tpu.vector_store %arg3[%c0_25, %c0_26, %c0_27], %36 {strides = array<i32>} : memref<2x16x128xf32, #tpu.memory_space<vmem>>, vector<1x16x128xf32>,
    %c1_28 = arith.constant 1 : index
    %c0_29 = arith.constant 0 : index
    %c0_30 = arith.constant 0 : index
    %37 = vector.load %arg0[%c1_28, %c0_29, %c0_30] : memref<2x16x8xf32, #tpu.memory_space<vmem>>, vector<1x16x8xf32>
    %38 = vector.shape_cast %37 : vector<1x16x8xf32> to vector<16x8xf32>
    %c0_31 = arith.constant 0 : index
    %c0_32 = arith.constant 0 : index
    %c0_33 = arith.constant 0 : index
    %39 = vector.load %arg2[%c0_31, %c0_32, %c0_33] : memref<3x8x128xf32, #tpu.memory_space<vmem>>, vector<1x8x128xf32>
    %40 = vector.shape_cast %39 : vector<1x8x128xf32> to vector<8x128xf32>
    %cst_34 = arith.constant dense<0.000000e+00> : vector<16x128xf32>
    %41 = tpu.matmul %38, %40, %cst_34 {dimension_numbers = #tpu.dot_dimension_numbers<[1], [0], [0], [1], [0, 0, 1, 1], [], []>} : vector<16x8xf32>, vector<8x128xf32>, vector<16x128xf32> -> vector<16x128xf32>
    %cst_35 = arith.constant 0.000000e+00 : f32
    %42 = vector.broadcast %cst_35 : f32 to vector<16x128xf32>
    %43 = arith.cmpf ogt, %41, %42 : vector<16x128xf32>
    %cst_36 = arith.constant 0.00999999977 : f32
    %44 = vector.broadcast %cst_36 : f32 to vector<16x128xf32>
    %45 = arith.mulf %44, %41 : vector<16x128xf32>
    %46 = arith.select %43, %41, %45 : vector<16x128xi1>, vector<16x128xf32>
    %c0_37 = arith.constant 0 : index
    %c0_38 = arith.constant 0 : index
    %c0_39 = arith.constant 0 : index
    %47 = vector.load %arg1[%c0_37, %c0_38, %c0_39] : memref<2x16x16xf32, #tpu.memory_space<vmem>>, vector<1x16x16xf32>
    %48 = vector.shape_cast %47 : vector<1x16x16xf32> to vector<16x16xf32>
    %cst_40 = arith.constant dense<0.000000e+00> : vector<16x8xf32>
    %49 = tpu.matmul %48, %38, %cst_40 {dimension_numbers = #tpu.dot_dimension_numbers<[1], [0], [0], [1], [0, 0, 1, 1], [], []>} : vector<16x16xf32>, vector<16x8xf32>, vector<16x8xf32> -> vector<16x8xf32>
    %c1_41 = arith.constant 1 : index
    %c0_42 = arith.constant 0 : index
    %c0_43 = arith.constant 0 : index
    %50 = vector.load %arg2[%c1_41, %c0_42, %c0_43] : memref<3x8x128xf32, #tpu.memory_space<vmem>>, vector<1x8x128xf32>
    %51 = vector.shape_cast %50 : vector<1x8x128xf32> to vector<8x128xf32>
    %cst_44 = arith.constant dense<0.000000e+00> : vector<16x128xf32>
    %52 = tpu.matmul %49, %51, %cst_44 {dimension_numbers = #tpu.dot_dimension_numbers<[1], [0], [0], [1], [0, 0, 1, 1], [], []>} : vector<16x8xf32>, vector<8x128xf32>, vector<16x128xf32> -> vector<16x128xf32>
    %cst_45 = arith.constant 0.000000e+00 : f32
    %53 = vector.broadcast %cst_45 : f32 to vector<16x128xf32>
    %54 = arith.cmpf ogt, %52, %53 : vector<16x128xf32>
    %cst_46 = arith.constant 0.00999999977 : f32
    %55 = vector.broadcast %cst_46 : f32 to vector<16x128xf32>
    %56 = arith.mulf %55, %52 : vector<16x128xf32>
    %57 = arith.select %54, %52, %56 : vector<16x128xi1>, vector<16x128xf32>
    %58 = arith.addf %46, %57 : vector<16x128xf32>
    %c1_47 = arith.constant 1 : index
    %c0_48 = arith.constant 0 : index
    %c0_49 = arith.constant 0 : index
    %59 = vector.load %arg1[%c1_47, %c0_48, %c0_49] : memref<2x16x16xf32, #tpu.memory_space<vmem>>, vector<1x16x16xf32>
    %60 = vector.shape_cast %59 : vector<1x16x16xf32> to vector<16x16xf32>
    %cst_50 = arith.constant dense<0.000000e+00> : vector<16x8xf32>
    %61 = tpu.matmul %60, %38, %cst_50 {dimension_numbers = #tpu.dot_dimension_numbers<[1], [0], [0], [1], [0, 0, 1, 1], [], []>} : vector<16x16xf32>, vector<16x8xf32>, vector<16x8xf32> -> vector<16x8xf32>
    %c2_51 = arith.constant 2 : index
    %c0_52 = arith.constant 0 : index
    %c0_53 = arith.constant 0 : index
    %62 = vector.load %arg2[%c2_51, %c0_52, %c0_53] : memref<3x8x128xf32, #tpu.memory_space<vmem>>, vector<1x8x128xf32>
    %63 = vector.shape_cast %62 : vector<1x8x128xf32> to vector<8x128xf32>
    %cst_54 = arith.constant dense<0.000000e+00> : vector<16x128xf32>
    %64 = tpu.matmul %61, %63, %cst_54 {dimension_numbers = #tpu.dot_dimension_numbers<[1], [0], [0], [1], [0, 0, 1, 1], [], []>} : vector<16x8xf32>, vector<8x128xf32>, vector<16x128xf32> -> vector<16x128xf32>
    %cst_55 = arith.constant 0.000000e+00 : f32
    %65 = vector.broadcast %cst_55 : f32 to vector<16x128xf32>
    %66 = arith.cmpf ogt, %64, %65 : vector<16x128xf32>
    %cst_56 = arith.constant 0.00999999977 : f32
    %67 = vector.broadcast %cst_56 : f32 to vector<16x128xf32>
    %68 = arith.mulf %67, %64 : vector<16x128xf32>
    %69 = arith.select %66, %64, %68 : vector<16x128xi1>, vector<16x128xf32>
    %70 = arith.addf %58, %69 : vector<16x128xf32>
    %c1_57 = arith.constant 1 : index
    %c0_58 = arith.constant 0 : index
    %c0_59 = arith.constant 0 : index
    %71 = vector.load %arg3[%c1_57, %c0_58, %c0_59] : memref<2x16x128xf32, #tpu.memory_space<vmem>>, vector<1x16x128xf32>
    %72 = vector.shape_cast %71 : vector<1x16x128xf32> to vector<16x128xf32>
    %73 = vector.shape_cast %70 : vector<16x128xf32> to vector<1x16x128xf32>
    tpu.vector_store %arg3[%c1_57, %c0_58, %c0_59], %73 {strides = array<i32>} : memref<2x16x128xf32, #tpu.memory_space<vmem>>, vector<1x16x128xf32>,
    return
  }
}

</mosaic_0001>

<bundles_post_ra>
// kernel: tpu_custom_call.1
= control target key start
LH: loop header
LB: loop body
LE: loop exit
PB: predicated region body
PF: predicated region fallthrough
CT: control target
= control target key end

     0   :  { %8 = vsyncpa [#allocation3], 0  ;;  %s1213_s0 = inlined_call_operand.vmem [shape: f32[2,16,8], index: 0, kind: input, shape index: {}]   ;;  %s1214_s1 = inlined_call_operand.vmem [shape: f32[2,16,16], index: 1, kind: input, shape index: {}]   ;;  %s1215_s2 = inlined_call_operand.hbm [shape: f32[3,8,128], index: 2, kind: input, shape index: {}]   ;;  %s1216_s3 = inlined_call_operand.hbm [shape: f32[2,16,128], index: 3, kind: output, shape index: {}]  }
   0x1   :  { %9 = vsyncpa [#allocation4], 0  ;;  %s1115_s12 = smov [#allocation2]   ;;  %s1067_s16 = scalar_lea.hbm %s1215_s2, 384 }
   0x2   :  { %s19_s13 = sshll.u32 %s1115_s12, 4  ;;  %p1068_p0 = scmp.ne.s32.totalorder %s1215_s2, %s1067_s16  ;;  %s20_s13 = int_to_ptr.vmem [resolvable:$true] %s19_s13 }
   0x3   :  { %p1071_p1 = scmp.lt.u32.totalorder %s1067_s16, %s1215_s2 }
   0x5   :  { %p1073_p2 = pnand %p1071_p1, %p1068_p0 }
   0x7   :  { %1076 = shalt.err (!%p1073_p2)
}
   0x8   :  { %s1077_s21 = scalar_lea.vmem %s20_s13, 384  ;;  %p1082_p4 = scmp.lt.s32.totalorder %s20_s13, %s20_s13 }
   0x9   :  { %p1078_p3 = scmp.ne.s32.totalorder %s20_s13, %s1077_s21  ;;  %p1083_p5 = scmp.lt.s32.totalorder %s1077_s21, %s1077_s21 }
   0xb   :  { %p1084_p6 = por %p1083_p5, %p1082_p4 }
   0xd   :  { %p1085_p7 = pnand %p1084_p6, %p1078_p3 }
   0xf   :  { %1088 = shalt.err (!%p1085_p7)
}
  0x10   :  { %s1116_s22 = smov 128   ;;  %s1117_s23 = smov 8  }
  0x11   :  { %25 = dma.hbm_to_vmem [thread:$0]  %s1215_s2, 384, %s20_s13, [#allocation3], %s1116_s22, %s1116_s22, %s1117_s23  }
  0x12   :  { %1111 = dma.done.wait [#allocation3], 384  }
  0x13   :  { %1112 = vsyncadd [#allocation3], 4294966912  ;;  %vm122_vm0 = vcmask 130048   ;;  %vm32_vm1 = vcmask 64512   ;;  %v29_v0 = vld [vmem:[%s1213_s0] sm:$0xff]  ;;  %v30_v1 = vld [vmem:[%s1213_s0 + $0x8] sm:$0xff] }
  0x14   :  { %v120_v2 = vld [vmem:[%s1214_s1] sm:$0xff]  ;;  %v1047_v3 = vpack.c.bf16 %v30_v1, %v29_v0  ;;  %991 = vmatprep.mubr.msk.f32.mxu0 %vm32_vm1, %v29_v0  ;;  %v205_v5 = vld [vmem:[#allocation2 + $0x8] sm:$0xff]  ;;  %v935_v7 = vld [vmem:[%s1214_s1 + $0x10] sm:$0xff] }
  0x15   :  { %998 = vmatprep.mubr.msk.f32.mxu1 %vm122_vm0, %v120_v2  ;;  %v31_v4 = vld [vmem:[#allocation2] sm:$0xff]  ;;  %v121_v6 = vld [vmem:[%s1214_s1 + $0x8] sm:$0xff]  ;;  %v936_v8 = vld [vmem:[%s1214_s1 + $0x18] sm:$0xff] }
  0x16   :  { %1048 = vmatprep.subr.bf16.mxu1 %v1047_v3  ;;  %989 = vmatprep.subr.mxu0 %v31_v4  ;;  %v380_v9 = vld [vmem:[#allocation2 + $0x10] sm:$0xff]  ;;  %v942_v11 = vld [vmem:[%s1213_s0 + $0x18] sm:$0xff] }
  0x17   :  { %1050 = vmatpush3.bf16.msra.mxu1 %v1047_v3  ;;  %990 = vmatpush3.msra.mxu0 %v31_v4  ;;  %v941_v10 = vld [vmem:[%s1213_s0 + $0x10] sm:$0xff]  ;;  %s1118_s0 = smov [#allocation5]  }
  0x18   :  { %1052 = vmatprep.subr.bf16.mxu1 %v1047_v3  ;;  %992 = vmatmul.mubr.msk.f32.vlgmr.msra.gmra.mrb[0].mxu0 %vm32_vm1, %v30_v1  ;;  %v1055_v12 = vpack.c.bf16 %v942_v11, %v941_v10  ;;  %s917_s1 = sshll.u32 %s1118_s0, 4  ;;  %s918_s1 = int_to_ptr.vmem [resolvable:$true] %s917_s1 }
  0x19   :  { %1001 = vmatprep.subr.mxu0 %v205_v5  ;;  %s1089_s14 = scalar_lea.vmem %s918_s1, 512  ;;  %p1094_p9 = scmp.lt.s32.totalorder %s918_s1, %s918_s1 }
  0x1a   :  { %999 = vmatmul.mubr.msk.f32.vlgmr.msra.gmra.mrb[0].mxu1 %vm122_vm0, %v121_v6  ;;  %1002 = vmatpush3.msra.mxu0 %v205_v5  ;;  %p1090_p8 = scmp.ne.s32.totalorder %s918_s1, %s1089_s14  ;;  %p1095_p10 = scmp.lt.s32.totalorder %s1089_s14, %s1089_s14 }
  0x1b   :  { %1054 = vmatpush3.bf16.msra.mxu1 %v1047_v3  ;;  %1010 = vmatprep.mubr.msk.f32.mxu1 %vm122_vm0, %v935_v7 }
  0x1c   :  { %1018 = vmatprep.subr.mxu1 %v31_v4  ;;  %1013 = vmatprep.subr.mxu0 %v380_v9  ;;  %p1096_p11 = por %p1095_p10, %p1094_p9 }
  0x1e   :  { %1011 = vmatmul.mubr.msk.f32.vlgmr.msra.gmra.mrb[2].mxu1 %vm122_vm0, %v936_v8  ;;  %p1097_p12 = pnand %p1096_p11, %p1090_p8 }
  0x1f   :  { %1019 = vmatpush3.msra.mxu1 %v31_v4  ;;  %1020 = vmatprep.mubr.msk.f32.mxu1 %vm32_vm1, %v941_v10 }
  0x20   :  { %1030 = vmatprep.subr.mxu1 %v205_v5 }
  0x22   :  { %1021 = vmatmul.mubr.msk.f32.vlgmr.msra.gmra.mrb[4].mxu1 %vm32_vm1, %v942_v11 }
  0x23   :  { %1031 = vmatpush3.msra.mxu1 %v205_v5 }
  0x24   :  { %1042 = vmatprep.subr.mxu1 %v380_v9 }
  0xeb   :  { %v993_v13 = vpop.f32.mrb[0].mxu0 }
  0xec   :  { %v105_v14 = vpop.f32.mrb[1].mxu0  ;;  %v117_v21 = vmul.f32 0.01, %v993_v13  ;;  %vm115_vm2 = vcmp.gt.f32.partialorder %v993_v13, 0.0 }
  0xed   :  { %v1000_v15 = vpop.f32.mrb[0].mxu1  ;;  %v116_v22 = vmul.f32 0.01, %v105_v14  ;;  %vm114_vm3 = vcmp.gt.f32.partialorder %v105_v14, 0.0 }
  0xee   :  { %v195_v16 = vpop.f32.mrb[1].mxu1  ;;  %v119_v27 = vsel %vm115_vm2, %v993_v13, %v117_v21 }
  0xef   :  { %1003 = vmatprep.mubr.msk.f32.mxu0 %vm32_vm1, %v195_v16  ;;  %v118_v29 = vsel %vm114_vm3, %v105_v14, %v116_v22 }
  0xf0   :  { %1004 = vmatmul.mubr.msk.f32.vlgmr.msra.gmra.mrb[2].mxu0 %vm32_vm1, %v1000_v15 }
  0xf1   :  { %v1012_v17 = vpop.f32.mrb[2].mxu1  ;;  %1014 = vmatpush3.msra.mxu0 %v380_v9 }
  0xf2   :  { %v370_v18 = vpop.f32.mrb[3].mxu1  ;;  %1056 = vmatprep.subr.bf16.mxu0 %v1055_v12 }
  0xf3   :  { %1015 = vmatprep.mubr.msk.f32.mxu0 %vm32_vm1, %v370_v18 }
  0xf4   :  { %1016 = vmatmul.mubr.msk.f32.vlgmr.msra.gmra.mrb[4].mxu0 %vm32_vm1, %v1012_v17 }
  0xf5   :  { %1058 = vmatpush3.bf16.msra.mxu0 %v1055_v12  ;;  %1027 = vmatprep.mubr.msk.f32.mxu0 %vm122_vm0, %v120_v2  ;;  %v1022_v19 = vpop.f32.mrb[4].mxu1 }
  0xf6   :  { %1060 = vmatprep.subr.bf16.mxu0 %v1055_v12  ;;  %v548_v20 = vpop.f32.mrb[5].mxu1  ;;  %v560_v45 = vmul.f32 0.01, %v1022_v19  ;;  %vm558_vm8 = vcmp.gt.f32.partialorder %v1022_v19, 0.0 }
  0xf7   :  { %v559_v46 = vmul.f32 0.01, %v548_v20  ;;  %vm557_vm9 = vcmp.gt.f32.partialorder %v548_v20, 0.0 }
  0xf8   :  { %1028 = vmatmul.mubr.msk.f32.vlgmr.msra.gmra.mrb[6].mxu0 %vm122_vm0, %v121_v6  ;;  %v562_v51 = vsel %vm558_vm8, %v1022_v19, %v560_v45 }
  0xf9   :  { %1062 = vmatpush3.bf16.msra.mxu0 %v1055_v12  ;;  %1039 = vmatprep.mubr.msk.f32.mxu0 %vm122_vm0, %v935_v7  ;;  %v561_v53 = vsel %vm557_vm9, %v548_v20, %v559_v46 }
  0xfc   :  { %1040 = vmatmul.mubr.msk.f32.vlgmr.msra.gmra.mrb[8].mxu0 %vm122_vm0, %v936_v8 }
 0x1c3   :  { %v1005_v23 = vpop.f32.mrb[2].mxu0 }
 0x1c4   :  { %vm288_vm4 = vcmp.gt.f32.partialorder %v1005_v23, 0.0  ;;  %v290_v24 = vmul.f32 0.01, %v1005_v23  ;;  %v278_v25 = vpop.f32.mrb[3].mxu0 }
 0x1c5   :  { %vm287_vm5 = vcmp.gt.f32.partialorder %v278_v25, 0.0  ;;  %v289_v26 = vmul.f32 0.01, %v278_v25 }
 0x1c6   :  { %v292_v28 = vsel %vm288_vm4, %v1005_v23, %v290_v24 }
 0x1c7   :  { %v294_v30 = vadd.f32 %v292_v28, %v119_v27  ;;  %v291_v31 = vsel %vm287_vm5, %v278_v25, %v289_v26  ;;  %v1017_v32 = vpop.f32.mrb[4].mxu0 }
 0x1c8   :  { %v293_v33 = vadd.f32 %v291_v31, %v118_v29  ;;  %vm463_vm6 = vcmp.gt.f32.partialorder %v1017_v32, 0.0  ;;  %v465_v34 = vmul.f32 0.01, %v1017_v32  ;;  %v453_v35 = vpop.f32.mrb[5].mxu0 }
 0x1c9   :  { %vm462_vm7 = vcmp.gt.f32.partialorder %v453_v35, 0.0  ;;  %v464_v36 = vmul.f32 0.01, %v453_v35 }
 0x1ca   :  { %v467_v37 = vsel %vm463_vm6, %v1017_v32, %v465_v34 }
 0x1cb   :  { %v469_v38 = vadd.f32 %v467_v37, %v294_v30  ;;  %v466_v39 = vsel %vm462_vm7, %v453_v35, %v464_v36  ;;  %v1029_v40 = vpop.f32.mrb[6].mxu0 }
 0x1cc   :  { %v468_v41 = vadd.f32 %v466_v39, %v293_v33  ;;  %v637_v42 = vpop.f32.mrb[7].mxu0 }
 0x1cd   :  { %471 = vst [vmem:[#allocation5 + $0x8] sm:$0xff] %v469_v38  ;;  %1032 = vmatprep.mubr.msk.f32.mxu1 %vm32_vm1, %v637_v42 }
 0x1ce   :  { %470 = vst [vmem:[#allocation5] sm:$0xff] %v468_v41  ;;  %1033 = vmatmul.mubr.msk.f32.vlgmr.msra.gmra.mrb[6].mxu1 %vm32_vm1, %v1029_v40 }
 0x1cf   :  { %v1041_v43 = vpop.f32.mrb[8].mxu0  ;;  %1043 = vmatpush3.msra.mxu1 %v380_v9 }
 0x1d0   :  { %v810_v44 = vpop.f32.mrb[9].mxu0 }
 0x1d1   :  { %1044 = vmatprep.mubr.msk.f32.mxu1 %vm32_vm1, %v810_v44 }
 0x1d2   :  { %1045 = vmatmul.mubr.msk.f32.vlgmr.msra.gmra.mrb[8].mxu1 %vm32_vm1, %v1041_v43 }
 0x2a1   :  { %v1034_v47 = vpop.f32.mrb[6].mxu1 }
 0x2a2   :  { %vm729_vm10 = vcmp.gt.f32.partialorder %v1034_v47, 0.0  ;;  %v731_v48 = vmul.f32 0.01, %v1034_v47  ;;  %v719_v49 = vpop.f32.mrb[7].mxu1 }
 0x2a3   :  { %vm728_vm11 = vcmp.gt.f32.partialorder %v719_v49, 0.0  ;;  %v730_v50 = vmul.f32 0.01, %v719_v49 }
 0x2a4   :  { %v733_v52 = vsel %vm729_vm10, %v1034_v47, %v731_v48 }
 0x2a5   :  { %v735_v54 = vadd.f32 %v733_v52, %v562_v51  ;;  %v732_v55 = vsel %vm728_vm11, %v719_v49, %v730_v50  ;;  %v1046_v56 = vpop.f32.mrb[8].mxu1 }
 0x2a6   :  { %v734_v57 = vadd.f32 %v732_v55, %v561_v53  ;;  %vm902_vm12 = vcmp.gt.f32.partialorder %v1046_v56, 0.0  ;;  %v904_v58 = vmul.f32 0.01, %v1046_v56  ;;  %v892_v59 = vpop.f32.mrb[9].mxu1 }
 0x2a7   :  { %vm901_vm13 = vcmp.gt.f32.partialorder %v892_v59, 0.0  ;;  %v903_v60 = vmul.f32 0.01, %v892_v59 }
 0x2a8   :  { %v906_v61 = vsel %vm902_vm12, %v1046_v56, %v904_v58 }
 0x2a9   :  { %v908_v62 = vadd.f32 %v906_v61, %v735_v54  ;;  %v905_v63 = vsel %vm901_vm13, %v892_v59, %v903_v60 }
 0x2aa   :  { %v907_v0 = vadd.f32 %v905_v63, %v734_v57 }
 0x2ab   :  { %911 = vst [vmem:[#allocation5 + $0x18] sm:$0xff] %v908_v62 }
 0x2ac   :  { %910 = vst [vmem:[#allocation5 + $0x10] sm:$0xff] %v907_v0 }
 0x2ad   :  { %1100 = shalt.err (!%p1097_p12)
}
 0x2ae   :  { %s1101_s17 = scalar_lea.hbm %s1216_s3, 512 }
 0x2af   :  { %p1102_p13 = scmp.ne.s32.totalorder %s1216_s3, %s1101_s17  ;;  %p1105_p0 = scmp.lt.u32.totalorder %s1101_s17, %s1216_s3 }
 0x2b1   :  { %p1107_p1 = pnand %p1105_p0, %p1102_p13 }
 0x2b3   :  { %1110 = shalt.err (!%p1107_p1)
}
 0x2b4   :  { %923 = dma.vmem_to_hbm [thread:$0]  %s918_s1, 512, %s1216_s3, [#allocation4], %s1116_s22, %s1116_s22, %s1117_s23  }
 0x2b5   :  { %1113 = dma.done.wait [#allocation4], 512  }
 0x2b6   :  { %1114 = vsyncadd [#allocation4], 4294966784 }
 0x2b7   :  { %927 = vsyncpa [#allocation3], 1 }
 0x2b8   :  { %928 = vsyncpa [#allocation4], 1 }

</bundles_post_ra>
